<compile_context>
chip_gen: v6e
topology: v6e:2x2x1
jax: 0.10.0
libtpu: 0.0.40
codegen_flags: <defaults>
</compile_context>

<pallas_src>
import math
import functools

import jax
import jax.numpy as jnp
from jax import lax
from jax.experimental import pallas as pl
from jax.experimental.pallas import tpu as pltpu


def _make_pe_table(d_model: int, max_len: int) -> jnp.ndarray:
    """Sinusoidal table, shape [max_len, 1, d_model] (PyTorch buffer layout)."""
    position = jnp.arange(max_len, dtype=jnp.float32)[:, None]           # [L, 1]
    div_term = jnp.exp(jnp.arange(0, d_model, 2, dtype=jnp.float32)
                       * (-math.log(10000.0) / d_model))                 # [D/2]
    pe = jnp.zeros((max_len, d_model), dtype=jnp.float32)
    pe = pe.at[:, 0::2].set(jnp.sin(position * div_term))
    pe = pe.at[:, 1::2].set(jnp.cos(position * div_term))
    return pe[:, None, :]


def _srl(v, n):
    return lax.shift_right_logical(v, jnp.int32(n))


def _pe_add_dropout_kernel(seed_ref, x_ref, pe_ref, o_ref, *,
                           p: float, training: bool, tile_s: int):
    # x_ref / o_ref : [tile_s, B*D]  (lane-dense);  pe_ref : [tile_s, D]
    W = x_ref.shape[1]            # B*D
    # Replicate the pe block across the batch in VMEM (log2(B) lane concats).
    # This is VPU/XLU filler hidden under the HBM DMAs; HBM only sees [S, D].
    pe_full = pe_ref[...].astype(x_ref.dtype)
    while pe_full.shape[1] < W:
        take = min(pe_full.shape[1], W - pe_full.shape[1])
        pe_full = jnp.concatenate([pe_full, pe_full[:, :take]], axis=1)

    val = x_ref[...] + pe_full

    if training and p > 0.0:
        # Counter-based dropout: lowbias32 hash of the global flat index mixed
        # with the seed.  int32 ops wrap (two's complement), so this is a
        # deterministic, tiling-independent per-element uniform draw.
        shape = val.shape
        row = lax.broadcasted_iota(jnp.int32, shape, 0) + pl.program_id(0) * tile_s
        col = lax.broadcasted_iota(jnp.int32, shape, 1)
        h = row * jnp.int32(W) + col
        h = h * jnp.int32(-1640531535) + seed_ref[0]      # * 0x9E3779B1 + seed
        h = h ^ _srl(h, 16)
        h = h * jnp.int32(2146038061)                      # 0x7FEB352D
        h = h ^ _srl(h, 15)
        h = h * jnp.int32(-2073450869)                     # 0x846CA68B
        h = h ^ _srl(h, 16)
        r = h & jnp.int32(0x7FFFFFFF)                      # 31 uniform bits, >= 0
        thr = jnp.int32(min(int(round(p * 2147483648.0)), 2147483647))
        scale = jnp.asarray(1.0 / (1.0 - p), dtype=val.dtype)
        val = jnp.where(r >= thr, val * scale, jnp.zeros_like(val))

    o_ref[...] = val.astype(o_ref.dtype)


def _vmem_capacity_bytes() -> int:
    try:
        return int(pltpu.get_tpu_info().vmem_capacity_bytes)
    except Exception:
        return 64 * 1024 * 1024        # conservative (v7x-sized) fallback


def _block_budget_bytes(vmem: int) -> int:
    # Resident per step ~ 2x(x) + 2x(out) + 1x(pe tiled) + RNG temps + small pe
    # ~ 7 block-sized buffers -> ~vmem/12 per block leaves headroom:
    #   v7x  (64 MiB VMEM)  -> ~5.3 MiB blocks
    #   v5e/v6e (128 MiB)   -> capped at 8 MiB blocks
    return max(512 * 1024, min(8 * 1024 * 1024, vmem // 12))


def _sublane_multiple(itemsize: int) -> int:
    # f32 -> 8, bf16 -> 16, int8/fp8 -> 32 (sub-32-bit dtypes pack sublanes).
    return max(8, 32 // max(itemsize, 1))


def _pick_tile_s(S: int, row_bytes: int, itemsize: int, budget: int) -> int:
    """Sequence tile: always a multiple of the sublane count (ragged last/only
    block is clipped by Pallas), sized from the VMEM budget."""
    sub = _sublane_multiple(itemsize)
    rows = max(1, budget // max(row_bytes, 1))
    if rows >= S:
        # Whole array fits in one block.  Still split into 2 steps when the
        # shape allows, so both TensorCores on v7x get work.
        if S >= 2 * sub:
            half = -(-S // 2)
            return -(-half // sub) * sub
        return -(-S // sub) * sub          # single (possibly padded) block
    return max(sub, (rows // sub) * sub)


def positional_encoding_forward(x: jnp.ndarray,
                                pe_table: jnp.ndarray,
                                *,
                                p: float = 0.1,
                                training: bool = False,
                                seed: int = 0) -> jnp.ndarray:
    """x: [seq_len, batch, d_model]; pe_table: [max_len, 1, d_model] or [max_len, d_model]."""
    assert 0.0 <= p < 1.0, "dropout p must be in [0, 1)"
    S, B, D = x.shape
    pe2d = pe_table.reshape(pe_table.shape[0], -1)     # [max_len, D], free reshape
    assert pe2d.shape[0] >= S and pe2d.shape[1] == D

    dtype = x.dtype
    itemsize = jnp.dtype(dtype).itemsize
    W = B * D
    x2 = x.reshape(S, W)                               # lane-dense view, free

    vmem = _vmem_capacity_bytes()
    tile_s = _pick_tile_s(S, W * itemsize, itemsize, _block_budget_bytes(vmem))
    grid = (pl.cdiv(S, tile_s),)

    kernel = functools.partial(_pe_add_dropout_kernel, p=float(p),
                               training=bool(training), tile_s=tile_s)
    seed_arr = jnp.asarray([seed], dtype=jnp.int32)

    out2 = pl.pallas_call(
        kernel,
        out_shape=jax.ShapeDtypeStruct((S, W), dtype),
        grid_spec=pltpu.PrefetchScalarGridSpec(
            num_scalar_prefetch=1,
            grid=grid,
            in_specs=[
                pl.BlockSpec((tile_s, W), lambda i, seed: (i, 0)),   # x stream
                pl.BlockSpec((tile_s, D), lambda i, seed: (i, 0)),   # pe: [S, D] only
            ],
            out_specs=pl.BlockSpec((tile_s, W), lambda i, seed: (i, 0)),
        ),
        compiler_params=pltpu.CompilerParams(
            dimension_semantics=("parallel",),
            vmem_limit_bytes=min(64 * 1024 * 1024, (vmem * 3) // 4)),
    )(seed_arr, x2, pe2d)

    return out2.reshape(S, B, D)


if __name__ == "__main__":
    d_model, seq_len, batch, max_len = 32, 8, 2, 5000

    key = jax.random.PRNGKey(0)
    x = jax.random.normal(key, (seq_len, batch, d_model), dtype=jnp.float32)
    pe_table = _make_pe_table(d_model, max_len)        # [max_len, 1, d_model]

    # Eval-mode forward (dropout identity) — matches PyTorch .eval() exactly.
    out = jax.block_until_ready(
        positional_encoding_forward(x, pe_table, p=0.1, training=False))
    ref = x + pe_table[:seq_len]
    assert out.shape == (seq_len, batch, d_model)
    assert jnp.allclose(out, ref, atol=1e-6), "eval-mode mismatch vs reference"

    # Training-mode forward: every element must be 0 or (x + pe) / (1 - p).
    # (RNG stream differs from PyTorch's; keep-prob semantics are identical.)
    p = 0.1
    out_tr = jax.block_until_ready(
        positional_encoding_forward(x, pe_table, p=p, training=True, seed=123))
    assert out_tr.shape == (seq_len, batch, d_model)
    ok = jnp.isclose(out_tr, 0.0) | jnp.isclose(out_tr, ref / (1.0 - p),
                                                rtol=1e-5, atol=1e-5)
    assert bool(jnp.all(ok)), "training-mode values not {0, scaled(x+pe)}"

    # Larger shape with a non-dividing S: exercises the ragged cdiv grid and
    # the multi-step (pipelined / megacore-splittable) path.
    S2, B2, D2 = 1000, 4, 128
    xl = jax.random.normal(jax.random.PRNGKey(1), (S2, B2, D2), dtype=jnp.float32)
    pel = _make_pe_table(D2, 2048)
    outl = jax.block_until_ready(
        positional_encoding_forward(xl, pel, p=0.1, training=False))
    refl = xl + pel[:S2]
    assert jnp.allclose(outl, refl, atol=1e-5), "tiled-path mismatch vs reference"

    print("KERNEL_OK")
</pallas_src>

<mosaic_0001>
module attributes {stable_mosaic.version = 11 : i64} {
  func.func @_pe_add_dropout_kernel(%arg0: i32, %arg1: memref<1xi32, #tpu.memory_space<smem>>, %arg2: memref<8x64xf32, #tpu.memory_space<vmem>>, %arg3: memref<8x32xf32, #tpu.memory_space<vmem>>, %arg4: memref<8x64xf32, #tpu.memory_space<vmem>>) attributes {dimension_semantics = [#tpu.dimension_semantics<parallel>], iteration_bounds = array<i64: 1>, scalar_prefetch = 1 : i64, scratch_operands = 0 : i64, tpu.core_type = #tpu.core_type<tc>, window_params = [{transform_indices = @transform_0, window_bounds = array<i64: 8, 64>}, {transform_indices = @transform_1, window_bounds = array<i64: 8, 32>}, {transform_indices = @transform_2, window_bounds = array<i64: 8, 64>}]} {
    %c0 = arith.constant 0 : index
    %c0_0 = arith.constant 0 : index
    %0 = vector.load %arg3[%c0, %c0_0] : memref<8x32xf32, #tpu.memory_space<vmem>>, vector<8x32xf32>
    %1 = tpu.concatenate %0, %0 in 1 : vector<8x32xf32>, vector<8x32xf32> -> vector<8x64xf32>
    %c0_1 = arith.constant 0 : index
    %c0_2 = arith.constant 0 : index
    %2 = vector.load %arg2[%c0_1, %c0_2] : memref<8x64xf32, #tpu.memory_space<vmem>>, vector<8x64xf32>
    %3 = arith.addf %2, %1 : vector<8x64xf32>
    %c0_3 = arith.constant 0 : index
    %c0_4 = arith.constant 0 : index
    %4 = vector.load %arg4[%c0_3, %c0_4] : memref<8x64xf32, #tpu.memory_space<vmem>>, vector<8x64xf32>
    tpu.vector_store %arg4[%c0_3, %c0_4], %3 {strides = array<i32>} : memref<8x64xf32, #tpu.memory_space<vmem>>, vector<8x64xf32>,
    return
  }
  func.func @transform_0(%arg0: i32, %arg1: memref<1xi32, #tpu.memory_space<smem>>) -> (i32, i32) {
    %c0_i32 = arith.constant 0 : i32
    %c0_i32_0 = arith.constant 0 : i32
    return %arg0, %c0_i32 : i32, i32
  }
  func.func @transform_1(%arg0: i32, %arg1: memref<1xi32, #tpu.memory_space<smem>>) -> (i32, i32) {
    %c0_i32 = arith.constant 0 : i32
    %c0_i32_0 = arith.constant 0 : i32
    return %arg0, %c0_i32 : i32, i32
  }
  func.func @transform_2(%arg0: i32, %arg1: memref<1xi32, #tpu.memory_space<smem>>) -> (i32, i32) {
    %c0_i32 = arith.constant 0 : i32
    %c0_i32_0 = arith.constant 0 : i32
    return %arg0, %c0_i32 : i32, i32
  }
}

</mosaic_0001>

<bundles_post_ra>
// kernel: tpu_custom_call.1
= control target key start
LH: loop header
LB: loop body
LE: loop exit
PB: predicated region body
PF: predicated region fallthrough
CT: control target
= control target key end

     0   :  { %s94_s0 = inlined_call_operand.<no memory space> [shape: s32[1], index: 0, kind: input, shape index: {}]   ;;  %s95_s1 = inlined_call_operand.vmem [shape: f32[8,64], index: 1, kind: input, shape index: {}]   ;;  %s96_s2 = inlined_call_operand.vmem [shape: f32[5000,32], index: 2, kind: input, shape index: {}]   ;;  %s97_s3 = inlined_call_operand.hbm [shape: f32[8,64], index: 3, kind: output, shape index: {}]  }
   0x1   :  { %v14_v0 = vld [vmem:[%s96_s2] sm:$0xff] }
   0x2   :  { %9 = vsyncpa [#allocation5], 0  ;;  %s63_s14 = smov 32   ;;  %vm19_vm0 = vcmask 261120   ;;  %v21_v1 = vld [vmem:[%s95_s1] sm:$0xff]  ;;  %s64_s0 = smov [#allocation4]  }
   0x3   :  { %16 = vrot.lane.b32.xlu0 %v14_v0, %s63_s14  ;;  %s31_s17 = sshll.u32 %s64_s0, 4  ;;  %vm23_vm1 = vcmask 523264   ;;  %s32_s17 = int_to_ptr.vmem [resolvable:$true] %s31_s17 }
   0x4   :  { %s41_s18 = scalar_lea.vmem %s32_s17, 128  ;;  %p46_p1 = scmp.lt.s32.totalorder %s32_s17, %s32_s17 }
   0x5   :  { %p42_p0 = scmp.ne.s32.totalorder %s32_s17, %s41_s18  ;;  %p47_p2 = scmp.lt.s32.totalorder %s41_s18, %s41_s18 }
   0x7   :  { %p48_p3 = por %p47_p2, %p46_p1 }
   0x9   :  { %p49_p4 = pnand %p48_p3, %p42_p0 }
  0x75   :  { %v17_v2 = vpop.permute.xlu0 %16 }
  0x76   :  { %v20_v3 = vsel %vm19_vm0, %v14_v0, %v17_v2 }
  0x77   :  { %v22_v4 = vadd.f32 %v21_v1, %v20_v3 }
  0x79   :  { %24 = vst.msk [vmem:[#allocation4] sm:$0xff] %vm23_vm1, %v22_v4 }
  0x7a   :  { %52 = shalt.err (!%p49_p4)
}
  0x7b   :  { %34 = dma.vmem_to_hbm [thread:$0]  %s32_s17, 128, %s97_s3, [#allocation5]  }
  0x7c   :  { %61 = dma.done.wait [#allocation5], 128  }
  0x7d   :  { %62 = vsyncadd [#allocation5], 4294967168 }
  0x7e   :  { %38 = vsyncpa [#allocation5], 1 }

</bundles_post_ra>
